<compile_context>
chip_gen: v6e
topology: v6e:2x2x1
jax: 0.10.0
libtpu: 0.0.40
codegen_flags: <defaults>
</compile_context>

<pallas_src>
import functools

import jax
import jax.numpy as jnp
import numpy as np
from jax.experimental import pallas as pl
from jax.experimental.pallas import tpu as pltpu

# Make the pure-JAX reference (and in-kernel dots) run at full f32 matmul
# precision so the correctness check is meaningful.
jax.config.update("jax_default_matmul_precision", "highest")


# --------------------------------------------------------------------------
# Kernel 1 (cold path, grid over T): supports (k>=1, row-stacked) and bias
# --------------------------------------------------------------------------
def _build_supports_kernel(cheb_k, emb_ref, bp_ref, sup_ref, bias_ref):
    # emb_ref : (1, N, E)        bp_ref  : (1, E, O)
    # sup_ref : (1, (K-1)*N, N)  bias_ref: (1, N, O)
    emb = emb_ref[0]                                         # (N, E)
    n = emb.shape[0]

    # s = softmax(relu(emb @ emb^T)); contract on E without explicit transpose.
    s = jax.lax.dot_general(emb, emb, (((1,), (1,)), ((), ())),
                            preferred_element_type=jnp.float32)
    s = jnp.maximum(s, 0.0)
    s = s - jnp.max(s, axis=-1, keepdims=True)
    e = jnp.exp(s)
    s = e / jnp.sum(e, axis=-1, keepdims=True)               # (N, N)

    row = jax.lax.broadcasted_iota(jnp.int32, (n, n), 0)
    col = jax.lax.broadcasted_iota(jnp.int32, (n, n), 1)
    on_diag = row == col
    eye = on_diag.astype(jnp.float32)

    # NOTE: the PyTorch einsum 'tnn,tns->tns' uses the DIAGONAL of 2*supports;
    # we reproduce that exactly: diag[n] = s[n, n].
    diag = jnp.sum(jnp.where(on_diag, s, 0.0), axis=-1, keepdims=True)  # (N,1)

    # Write each k >= 1 Chebyshev support directly into its destination rows
    # (identity support is applied implicitly in kernel 2).
    sup_ref[0, 0:n, :] = s
    t_km2, t_km1 = eye, s
    for k in range(2, cheb_k):
        t_k = 2.0 * diag * t_km1 - t_km2
        sup_ref[0, (k - 1) * n:k * n, :] = t_k
        t_km2, t_km1 = t_km1, t_k

    # bias = einsum('nd,do->no')
    bias_ref[0] = jnp.dot(emb, bp_ref[0], preferred_element_type=jnp.float32)


# --------------------------------------------------------------------------
# Kernel 2 (hot path, grid (T, B//Bblk)): theta-free, batch-blocked gconv
# --------------------------------------------------------------------------
def _gconv_kernel(sup_ref, x_ref, w_ref, embx_ref, bias_ref, out_ref):
    # sup_ref : (1, (K-1)*N, N)   x_ref   : (1, N, Bblk, I)
    # w_ref   : (1, K*I, E*O)     embx_ref: (1, N, 1, E*O)
    # bias_ref: (1, N, 1, O)      out_ref : (1, N, Bblk, O)
    x3 = x_ref[0]                                            # (N, Bblk, I)
    n, bb, i_dim = x3.shape
    ki = w_ref.shape[1]
    k_total = ki // i_dim
    o_dim = out_ref.shape[3]
    eo = embx_ref.shape[3]
    e_dim = eo // o_dim

    # --- Chebyshev propagation (k >= 1): ONE MXU matmul, contraction N -----
    x2 = x3.reshape(n, bb * i_dim)                           # lanes = (b, i)
    xg2 = jnp.dot(sup_ref[0], x2,
                  preferred_element_type=jnp.float32)        # ((K-1)*N, Bblk*I)
    xg3 = xg2.reshape((k_total - 1) * n, bb, i_dim)

    # --- stack [x | xg_1 | ... | xg_{K-1}] along lanes -> K*I contraction ---
    parts = [x3] + [xg3[(k - 1) * n:k * n] for k in range(1, k_total)]
    lhs = jnp.concatenate(parts, axis=-1).reshape(n * bb, ki)  # (N*Bblk, K*I)

    # --- fused weight contraction: ONE MXU matmul, contraction depth K*I ---
    z = jnp.dot(lhs, w_ref[0],
                preferred_element_type=jnp.float32)          # (N*Bblk, E*O)
    z = z.reshape(n, bb, eo)                                 # (N, Bblk, E*O)

    # --- emb-weighted reduction over e + bias (broadcast over batch) -------
    p = embx_ref[0] * z                                      # (N,1,EO)*(N,Bblk,EO)
    acc = bias_ref[0] + p[:, :, :o_dim]                      # (N, Bblk, O)
    for e in range(1, e_dim):
        acc = acc + p[:, :, e * o_dim:(e + 1) * o_dim]
    out_ref[0] = acc.astype(out_ref.dtype)


def _pick_batch_block(batch, cap=64):
    """Full batch per step if it is small; otherwise the largest divisor of B
    that is a multiple of 8 (BlockSpec sublane rule) and <= cap."""
    if batch <= cap:
        return batch
    for cand in range(cap, 7, -1):
        if cand % 8 == 0 and batch % cand == 0:
            return cand
    return batch


# --------------------------------------------------------------------------
# Module wrapper
# --------------------------------------------------------------------------
class DAGCNReducePallas:
    def __init__(self, num_time_steps, num_nodes, in_dims, out_dims,
                 cheb_k, embed_dim, spatial_attention=False,
                 key=jax.random.PRNGKey(0)):
        assert cheb_k >= 2, "cheb_k >= 2 required (as in the PyTorch module)"
        self.T = num_time_steps
        self.N = num_nodes
        self.I = in_dims
        self.O = out_dims
        self.K = cheb_k
        self.E = embed_dim
        self.spatial_attention = spatial_attention

        k1, k2, k3 = jax.random.split(key, 3)
        self.dn_embeddings = jax.random.normal(
            k1, (self.T, self.N, self.E), jnp.float32)
        self.weights_pool = jax.random.normal(
            k2, (self.T, self.E, self.K, self.I, self.O), jnp.float32)
        self.bias_pool = jax.random.normal(
            k3, (self.T, self.E, self.O), jnp.float32)

    def __call__(self, x):
        T, N, E, K, I, O = self.T, self.N, self.E, self.K, self.I, self.O
        B = x.shape[0]
        EO = E * O
        KI = K * I
        KN = (K - 1) * N

        bblk = _pick_batch_block(B)
        n_bb = B // bblk

        # ---- one-time wrapper-side layout plumbing (plain XLA ops) --------
        # w_flat[t, k*I + i, e*O + o] = weights_pool[t, e, k, i, o]
        w_flat = jnp.transpose(self.weights_pool,
                               (0, 2, 3, 1, 4)).reshape(T, KI, EO)
        # Hoisted embedding broadcast: emb_exp[t, n, e*O + o] = emb[t, n, e]
        emb_exp = jnp.repeat(self.dn_embeddings, O, axis=-1).reshape(T, N, 1, EO)
        # x_r[t, n, b, i] = x[b, t, n, i]
        x_r = jnp.transpose(x, (1, 2, 0, 3))

        # ---- kernel 1: row-stacked supports (k>=1) + bias (grid over T) ----
        sup_rows, bias = pl.pallas_call(
            functools.partial(_build_supports_kernel, K),
            out_shape=(
                jax.ShapeDtypeStruct((T, KN, N), jnp.float32),
                jax.ShapeDtypeStruct((T, N, O), jnp.float32),
            ),
            grid=(T,),
            in_specs=[
                pl.BlockSpec((1, N, E), lambda t: (t, 0, 0)),
                pl.BlockSpec((1, E, O), lambda t: (t, 0, 0)),
            ],
            out_specs=(
                pl.BlockSpec((1, KN, N), lambda t: (t, 0, 0)),
                pl.BlockSpec((1, N, O), lambda t: (t, 0, 0)),
            ),
            compiler_params=pltpu.CompilerParams(
                dimension_semantics=("parallel",)),
        )(self.dn_embeddings, self.bias_pool)
        bias4 = bias.reshape(T, N, 1, O)

        # ---- kernel 2: batch-blocked graph convolution, grid (T, B/Bblk) ---
        cost = pl.CostEstimate(
            flops=int(2 * T * B * N * (K * I * EO + (K - 1) * N * I)),
            transcendentals=0,
            bytes_accessed=int(4 * (B * T * N * (I + O)
                                    + T * (KN * N + KI * EO + N * EO + N * O))),
        )

        out_r = pl.pallas_call(
            _gconv_kernel,
            out_shape=jax.ShapeDtypeStruct((T, N, B, O), jnp.float32),
            grid=(T, n_bb),
            in_specs=[
                pl.BlockSpec((1, KN, N), lambda t, b: (t, 0, 0)),
                pl.BlockSpec((1, N, bblk, I), lambda t, b: (t, 0, b, 0)),
                pl.BlockSpec((1, KI, EO), lambda t, b: (t, 0, 0)),
                pl.BlockSpec((1, N, 1, EO), lambda t, b: (t, 0, 0, 0)),
                pl.BlockSpec((1, N, 1, O), lambda t, b: (t, 0, 0, 0)),
            ],
            out_specs=pl.BlockSpec((1, N, bblk, O), lambda t, b: (t, 0, b, 0)),
            compiler_params=pltpu.CompilerParams(
                dimension_semantics=("parallel", "parallel"),
                vmem_limit_bytes=32 * 1024 * 1024),
            cost_estimate=cost,
        )(sup_rows, x_r, w_flat, emb_exp, bias4)

        x_gconv = jnp.transpose(out_r, (2, 0, 1, 3))         # (B, T, N, O)

        if self.spatial_attention:
            eye = jnp.broadcast_to(jnp.eye(N, dtype=jnp.float32), (T, 1, N, N))
            sup_full = jnp.concatenate(
                [eye, sup_rows.reshape(T, K - 1, N, N)], axis=1)
            return x_gconv, sup_full
        return x_gconv, None


# --------------------------------------------------------------------------
# Pure-JAX reference (mirrors the PyTorch forward exactly)
# --------------------------------------------------------------------------
def reference_forward(mod: DAGCNReducePallas, x):
    emb = mod.dn_embeddings
    supports = jax.nn.softmax(
        jnp.maximum(jnp.einsum('tne,tse->tns', emb, emb), 0.0), axis=-1)
    unit = jnp.broadcast_to(jnp.eye(mod.N, dtype=jnp.float32),
                            (mod.T, mod.N, mod.N))
    support_set = [unit, supports]
    for _ in range(2, mod.K):
        support_set.append(
            jnp.einsum('tnn,tns->tns', 2.0 * supports, support_set[-1])
            - support_set[-2])
    supports_stk = jnp.stack(support_set, axis=1)
    theta = jnp.einsum('tnd,tdkio->tnkio', emb, mod.weights_pool)
    bias = jnp.einsum('tnd,tdo->tno', emb, mod.bias_pool)
    x_g = jnp.einsum('tknm,btmc->btknc', supports_stk, x)
    x_gconv = jnp.einsum('btkni,tnkio->btno', x_g, theta) + bias
    return x_gconv, supports_stk


if __name__ == "__main__":
    # Small deterministic example shapes
    B, T, N, I, O, K, E = 8, 4, 8, 4, 8, 3, 4

    key = jax.random.PRNGKey(0)
    kp, kx = jax.random.split(key)
    mod = DAGCNReducePallas(num_time_steps=T, num_nodes=N, in_dims=I,
                            out_dims=O, cheb_k=K, embed_dim=E,
                            spatial_attention=True, key=kp)
    x = jax.random.normal(kx, (B, T, N, I), jnp.float32)

    out, sup = mod(x)
    out = jax.block_until_ready(out)
    sup = jax.block_until_ready(sup)

    ref_out, ref_sup = reference_forward(mod, x)
    np.testing.assert_allclose(np.asarray(sup), np.asarray(ref_sup),
                               rtol=1e-5, atol=1e-5)
    np.testing.assert_allclose(np.asarray(out), np.asarray(ref_out),
                               rtol=1e-4, atol=2e-3)
    print("KERNEL_OK")
</pallas_src>

<mosaic_0001>
module attributes {stable_mosaic.version = 11 : i64} {
  func.func @_build_supports_kernel(%arg0: i32, %arg1: memref<1x8x4xf32, #tpu.memory_space<vmem>>, %arg2: memref<1x4x8xf32, #tpu.memory_space<vmem>>, %arg3: memref<1x16x8xf32, #tpu.memory_space<vmem>>, %arg4: memref<1x8x8xf32, #tpu.memory_space<vmem>>) attributes {dimension_semantics = [#tpu.dimension_semantics<parallel>], iteration_bounds = array<i64: 4>, scalar_prefetch = 0 : i64, scratch_operands = 0 : i64, tpu.core_type = #tpu.core_type<tc>, window_params = [{transform_indices = @transform_0, window_bounds = array<i64: 1, 8, 4>}, {transform_indices = @transform_1, window_bounds = array<i64: 1, 4, 8>}, {transform_indices = @transform_2, window_bounds = array<i64: 1, 16, 8>}, {transform_indices = @transform_3, window_bounds = array<i64: 1, 8, 8>}]} {
    %c0 = arith.constant 0 : index
    %c0_0 = arith.constant 0 : index
    %c0_1 = arith.constant 0 : index
    %0 = vector.load %arg1[%c0, %c0_0, %c0_1] : memref<1x8x4xf32, #tpu.memory_space<vmem>>, vector<1x8x4xf32>
    %1 = vector.shape_cast %0 : vector<1x8x4xf32> to vector<8x4xf32>
    %cst = arith.constant dense<0.000000e+00> : vector<8x8xf32>
    %2 = tpu.matmul %1, %1, %cst {dimension_numbers = #tpu.dot_dimension_numbers<[1], [1], [0], [0], [0, 0, 1, 0], [], []>, precision = #tpu.contract_precision<fp32>} : vector<8x4xf32>, vector<8x4xf32>, vector<8x8xf32> -> vector<8x8xf32>
    %cst_2 = arith.constant 0.000000e+00 : f32
    %3 = vector.broadcast %cst_2 : f32 to vector<8x8xf32>
    %4 = arith.maximumf %2, %3 : vector<8x8xf32>
    %cst_3 = arith.constant dense<0xFF800000> : vector<8xf32>
    %5 = vector.multi_reduction <maximumf>, %4, %cst_3 [1] : vector<8x8xf32> to vector<8xf32>
    %6 = vector.shape_cast %5 : vector<8xf32> to vector<8x1xf32>
    %7 = vector.broadcast %6 : vector<8x1xf32> to vector<8x8xf32>
    %8 = arith.subf %4, %7 : vector<8x8xf32>
    %9 = math.exp %8 : vector<8x8xf32>
    %cst_4 = arith.constant dense<0.000000e+00> : vector<8xf32>
    %10 = vector.multi_reduction <add>, %9, %cst_4 [1] : vector<8x8xf32> to vector<8xf32>
    %11 = vector.shape_cast %10 : vector<8xf32> to vector<8x1xf32>
    %12 = vector.broadcast %11 : vector<8x1xf32> to vector<8x8xf32>
    %13 = arith.divf %9, %12 : vector<8x8xf32>
    %14 = tpu.iota {dimensions = array<i32: 0>} : vector<8x8xi32>
    %15 = tpu.iota {dimensions = array<i32: 1>} : vector<8x8xi32>
    %16 = arith.cmpi eq, %14, %15 : vector<8x8xi32>
    %17 = arith.extui %16 : vector<8x8xi1> to vector<8x8xi32>
    %18 = arith.sitofp %17 : vector<8x8xi32> to vector<8x8xf32>
    %cst_5 = arith.constant 0.000000e+00 : f32
    %19 = vector.broadcast %cst_5 : f32 to vector<8x8xf32>
    %20 = arith.select %16, %13, %19 : vector<8x8xi1>, vector<8x8xf32>
    %cst_6 = arith.constant dense<0.000000e+00> : vector<8xf32>
    %21 = vector.multi_reduction <add>, %20, %cst_6 [1] : vector<8x8xf32> to vector<8xf32>
    %22 = vector.shape_cast %21 : vector<8xf32> to vector<8x1xf32>
    %c0_7 = arith.constant 0 : index
    %c0_8 = arith.constant 0 : index
    %c0_9 = arith.constant 0 : index
    %23 = vector.load %arg3[%c0_7, %c0_8, %c0_9] : memref<1x16x8xf32, #tpu.memory_space<vmem>>, vector<1x8x8xf32>
    %24 = vector.shape_cast %23 : vector<1x8x8xf32> to vector<8x8xf32>
    %25 = vector.shape_cast %13 : vector<8x8xf32> to vector<1x8x8xf32>
    tpu.vector_store %arg3[%c0_7, %c0_8, %c0_9], %25 {strides = array<i32>} : memref<1x16x8xf32, #tpu.memory_space<vmem>>, vector<1x8x8xf32>,
    %cst_10 = arith.constant 2.000000e+00 : f32
    %26 = vector.broadcast %cst_10 : f32 to vector<8x1xf32>
    %27 = arith.mulf %26, %22 : vector<8x1xf32>
    %28 = vector.broadcast %27 : vector<8x1xf32> to vector<8x8xf32>
    %29 = arith.mulf %28, %13 : vector<8x8xf32>
    %30 = arith.subf %29, %18 : vector<8x8xf32>
    %c0_11 = arith.constant 0 : index
    %c8 = arith.constant 8 : index
    %c0_12 = arith.constant 0 : index
    %31 = vector.load %arg3[%c0_11, %c8, %c0_12] : memref<1x16x8xf32, #tpu.memory_space<vmem>>, vector<1x8x8xf32>
    %32 = vector.shape_cast %31 : vector<1x8x8xf32> to vector<8x8xf32>
    %33 = vector.shape_cast %30 : vector<8x8xf32> to vector<1x8x8xf32>
    tpu.vector_store %arg3[%c0_11, %c8, %c0_12], %33 {strides = array<i32>} : memref<1x16x8xf32, #tpu.memory_space<vmem>>, vector<1x8x8xf32>,
    %c0_13 = arith.constant 0 : index
    %c0_14 = arith.constant 0 : index
    %c0_15 = arith.constant 0 : index
    %34 = vector.load %arg2[%c0_13, %c0_14, %c0_15] : memref<1x4x8xf32, #tpu.memory_space<vmem>>, vector<1x4x8xf32>
    %35 = vector.shape_cast %34 : vector<1x4x8xf32> to vector<4x8xf32>
    %cst_16 = arith.constant dense<0.000000e+00> : vector<8x8xf32>
    %36 = tpu.matmul %1, %35, %cst_16 {dimension_numbers = #tpu.dot_dimension_numbers<[1], [0], [0], [1], [0, 0, 1, 1], [], []>, precision = #tpu.contract_precision<fp32>} : vector<8x4xf32>, vector<4x8xf32>, vector<8x8xf32> -> vector<8x8xf32>
    %c0_17 = arith.constant 0 : index
    %c0_18 = arith.constant 0 : index
    %c0_19 = arith.constant 0 : index
    %37 = vector.load %arg4[%c0_17, %c0_18, %c0_19] : memref<1x8x8xf32, #tpu.memory_space<vmem>>, vector<1x8x8xf32>
    %38 = vector.shape_cast %37 : vector<1x8x8xf32> to vector<8x8xf32>
    %39 = vector.shape_cast %36 : vector<8x8xf32> to vector<1x8x8xf32>
    tpu.vector_store %arg4[%c0_17, %c0_18, %c0_19], %39 {strides = array<i32>} : memref<1x8x8xf32, #tpu.memory_space<vmem>>, vector<1x8x8xf32>,
    return
  }
  func.func @transform_0(%arg0: i32) -> (i32, i32, i32) {
    %c0_i32 = arith.constant 0 : i32
    %c0_i32_0 = arith.constant 0 : i32
    %c0_i32_1 = arith.constant 0 : i32
    return %arg0, %c0_i32, %c0_i32_0 : i32, i32, i32
  }
  func.func @transform_1(%arg0: i32) -> (i32, i32, i32) {
    %c0_i32 = arith.constant 0 : i32
    %c0_i32_0 = arith.constant 0 : i32
    %c0_i32_1 = arith.constant 0 : i32
    return %arg0, %c0_i32, %c0_i32_0 : i32, i32, i32
  }
  func.func @transform_2(%arg0: i32) -> (i32, i32, i32) {
    %c0_i32 = arith.constant 0 : i32
    %c0_i32_0 = arith.constant 0 : i32
    %c0_i32_1 = arith.constant 0 : i32
    return %arg0, %c0_i32, %c0_i32_0 : i32, i32, i32
  }
  func.func @transform_3(%arg0: i32) -> (i32, i32, i32) {
    %c0_i32 = arith.constant 0 : i32
    %c0_i32_0 = arith.constant 0 : i32
    %c0_i32_1 = arith.constant 0 : i32
    return %arg0, %c0_i32, %c0_i32_0 : i32, i32, i32
  }
}

</mosaic_0001>

<bundles_post_ra>
// kernel: tpu_custom_call.1
= control target key start
LH: loop header
LB: loop body
LE: loop exit
PB: predicated region body
PF: predicated region fallthrough
CT: control target
= control target key end

     0   :  { %9 = vsyncpa [#allocation3], 0  ;;  %s1647_s0 = inlined_call_operand.vmem [shape: f32[4,8,4], index: 0, kind: input, shape index: {}]   ;;  %s1648_s1 = inlined_call_operand.vmem [shape: f32[4,4,8], index: 1, kind: input, shape index: {}]   ;;  %s1649_s2 = inlined_call_operand.vmem [shape: f32[4,16,8], index: 2, kind: output, shape index: {0}]   ;;  %s1650_s3 = inlined_call_operand.hbm [shape: f32[4,8,8], index: 3, kind: output, shape index: {1}]  }
   0x1   :  { %11 = vsyncpa [#allocation3 + $0x1], 0  ;;  %s1475_s12 = smov 0   ;;  %s1477_s13 = smov 0  }
   0x2   :  { %s1479_s14 = smov 0   ;;  %s1481_s15 = smov 0  }
   0x3 LB: > { %s1496_s16 = sadd.s32 4294967295, %s1450_s15   ;;  %s1246_s17 = sadd.s32 4294967294, %s1450_s15   ;;  %s1450_s15 = sphi %s1481_s15, %s1656_s15   ;;  %s1446_s14 = sphi %s1479_s14, %s1655_s14   ;;  %s1442_s13 = sphi %s1477_s13, %s1654_s13   ;;  %s1438_s12 = sphi %s1475_s12, %s1653_s12  }
   0x4   : > { %s1500_s18 = sadd.s32 1, %s1450_s15   ;;  %s102_s19 = sadd.s32 1, %s1446_s14 }
   0x5   : > { %s99_s20 = ssub.s32 %s1450_s15, %s1500_s18  ;;  %p112_p0 = scmp.ne.s32.totalorder %s1446_s14, %s1442_s13 }
   0x6   : > { %p100_p1 = scmp.eq.s32.totalorder %s99_s20, 0  ;;  %p113_p2 = scmp.eq.s32.totalorder %s1496_s16, 3 }
   0x7   : > { %p118_p3 = scmp.ne.s32.totalorder %s1442_s13, %s1438_s12  ;;  %p119_p4 = scmp.eq.s32.totalorder %s1246_s17, 3 }
   0x8   : > { %s1511_s21 = scalar_select %p100_p1, %s1446_s14, %s102_s19  }
   0x9   : > { %p1513_p5 = por %p113_p2, %p112_p0  ;;  %p1517_p6 = por %p119_p4, %p118_p3 }
   0xa   : > { %p1249_p7 = scmp.ge.s32.totalorder %s1450_s15, 1  ;;  %p151_p8 = scmp.lt.s32.totalorder %s1450_s15, 5 }
   0xc   : > { %p152_p9 = pnand %p1249_p7, %p151_p8 }
   0xd   : > { %p183_p10 = scmp.lt.s32.totalorder (!%p152_p9), %s1496_s16, 3  ;;  %s180_s10 = sand.u32 (!%p152_p9), 1, %s1442_s13  }
   0xe   : > { %155 = sbr.rel (%p152_p9) target bundleno = 702 (0x2be), region = 28  ;;  %s1250_s11 = sshll.u32 (!%p152_p9), %s180_s10, 3 }
   0xf   : > { %s182_s17 = scalar_lea.vmem (!%p152_p9), [#allocation2], %s1250_s11  ;;  %s1257_s19 = sshll.u32 (!%p152_p9), %s1496_s16, 7 }
  0x10   : > { %s1150_s20 = sshll.u32 (!%p152_p9), %s182_s17, 4  ;;  %s1148_s26 = scalar_lea.hbm (!%p152_p9), %s1650_s3, %s1257_s19  ;;  %s1151_s20 = int_to_ptr.vmem [resolvable:$true] %s1150_s20 }
  0x11   : > { %s1134_s27 = scalar_lea.sflag (!%p152_p9), [#allocation3], %s180_s10 }
  0x13   : > { %v1452_v0 = vmov 0.0   ;;  %vm1453_vm0 = vmmov 0   ;;  %s1528_s24 = scalar_select %p183_p10, %s1496_s16, 3  ;;  %vm197_vm1 = vcmask 31744   ;;  %vm648_vm2 = vcmask 64512  }
  0x14   : > { %1285 = vmatprep.subr.mxu0 %v1452_v0  ;;  %1287 = vmatprep.mubr.msk.f32.mxu0 %vm1453_vm0, %v1452_v0  ;;  %vm677_vm3 = vcmask 1043456   ;;  %v660_v51 = vlaneseq }
  0x15   : > { %1290 = vmatprep.subr.mxu1 %v1452_v0  ;;  %1292 = vmatprep.mubr.msk.f32.mxu1 %vm1453_vm0, %v1452_v0  ;;  %s1251_s25 = sshll.u32 %s1528_s24, 3  ;;  %s1252_s29 = sshll.u32 %s1528_s24, 2 }
  0x16   : > { %s186_s28 = scalar_lea.vmem %s1647_s0, %s1251_s25  ;;  %s190_s5 = scalar_lea.vmem %s1648_s1, %s1252_s29  ;;  %v661_v52 = vshrl.u32 %v660_v51, 7  ;;  %v663_v53 = vand.u32 127, %v660_v51 }
  0x17   : > { %v196_v1 = vld [vmem:[%s186_s28] sm:$0xff]  ;;  %s1260_s6 = sshll.u32 %s1528_s24, 4  ;;  %s1390_s28 = scalar_lea.vmem %s1151_s20, 128 }
  0x18   : > { %v199_v2 = vsel %vm197_vm1, %v196_v1, 0  ;;  %v676_v27 = vld [vmem:[%s190_s5] sm:$0xf]  ;;  %s1602_s9 = scalar_lea.vmem %s1649_s2, %s1260_s6  ;;  %vm664_vm4 = vcmp.eq.s32.totalorder %v661_v52, %v663_v53  ;;  %p1391_p11 = scmp.ne.s32.totalorder %s1151_s20, %s1390_s28 }
  0x19   : > { %v1537_v3 = vand.u32 4294901760, %v199_v2  ;;  %v679_v28 = vsel %vm677_vm3, %v676_v27, 0  ;;  %s1454_s29 = smov [#allocation2]  }
  0x1a   : > { %v712_v29 = vand.u32 4294901760, %v679_v28  ;;  %p1392_p12 = pnand %p1391_p11, %p1513_p5  ;;  %s1394_s30 = sshll.u32 %s1454_s29, 4  ;;  %s1395_s30 = int_to_ptr.vmem [resolvable:$false] %s1394_s30 }
  0x1b   : > { %1286 = vmatpush3.xpose.msra.mxu0 %v1537_v3  ;;  %v1541_v4 = vsub.f32 %v199_v2, %v1537_v3  ;;  %s1396_s4 = scalar_lea.vmem %s1395_s30, 256  ;;  %p1397_p0 = scmp.lt.s32.totalorder %s1151_s20, %s1395_s30 }
  0x1c   : > { %1295 = vmatprep.subr.mxu0 %v1452_v0  ;;  %v789_v30 = vsub.f32 %v679_v28, %v712_v29  ;;  %p1393_p13 = pneg %p1392_p12  ;;  %p1398_p1 = scmp.lt.s32.totalorder %s1396_s4, %s1390_s28 }
  0x1d   : > { %v1545_v5 = vand.u32 4294901760, %v1541_v4 }
  0x1e   : > { %v790_v31 = vand.u32 4294901760, %v789_v30  ;;  %p1399_p2 = por %p1398_p1, %p1397_p0 }
  0x1f   : > { %v270_v6 = vsub.f32 %v1541_v4, %v1545_v5 }
  0x20   : > { %v791_v32 = vsub.f32 %v789_v30, %v790_v31  ;;  %p1400_p3 = pnand %p1399_p2, %p1393_p13 }
  0x21   : > { %v271_v7 = vand.u32 4294901760, %v270_v6 }
  0x22   : > { %v792_v33 = vand.u32 4294901760, %v791_v32 }
  0x23   : > { %1288 = vmatmul.mubr.f32.vlgmr.msra.gmra.mxu0 %v271_v7  ;;  %1291 = vmatpush3.xpose.msra.mxu1 %v271_v7 }
  0x24   : > { %1296 = vmatpush3.xpose.msra.mxu0 %v1541_v4  ;;  %1297 = vmatprep.mubr.msk.f32.mxu0 %vm1453_vm0, %v1452_v0 }
  0x25   : > { %1300 = vmatprep.subr.mxu1 %v1452_v0  ;;  %1305 = vmatprep.subr.mxu0 %v1452_v0 }
  0x26   : > { %1293 = vmatmul.mubr.f32.vlgmr.msra.gmra.mxu1 %v1537_v3 }
  0x27   : > { %1298 = vmatmul.mubr.f32.vlgmr.msra.gmra.mxu0 %v1541_v4  ;;  %1301 = vmatpush3.xpose.msra.mxu1 %v1537_v3 }
  0x28   : > { %1306 = vmatpush3.xpose.msra.mxu0 %v1545_v5  ;;  %1302 = vmatprep.mubr.msk.f32.mxu1 %vm1453_vm0, %v1452_v0 }
  0x29   : > { %1307 = vmatprep.mubr.msk.f32.mxu0 %vm1453_vm0, %v1452_v0  ;;  %1310 = vmatprep.subr.mxu1 %v1452_v0 }
  0x2a   : > { %1303 = vmatmul.mubr.f32.vlgmr.msra.gmra.mxu1 %v1545_v5  ;;  %1315 = vmatprep.subr.mxu0 %v1452_v0 }
  0x2b   : > { %1308 = vmatmul.mubr.f32.vlgmr.msra.gmra.mxu0 %v1537_v3  ;;  %1311 = vmatpush3.xpose.msra.mxu1 %v1537_v3 }
  0x2c   : > { %1312 = vmatprep.mubr.msk.f32.mxu1 %vm1453_vm0, %v1452_v0  ;;  %1317 = vmatprep.mubr.msk.f32.mxu0 %vm1453_vm0, %v1452_v0 }
  0x2d   : > { %1320 = vmatprep.subr.mxu1 %v1452_v0  ;;  %1316 = vmatpush3.msra.mxu0 %v712_v29 }
  0x2e   : > { %1313 = vmatmul.mubr.f32.vlgmr.msra.gmra.mxu1 %v1537_v3  ;;  %1325 = vmatprep.subr.mxu0 %v1452_v0 }
  0x2f   : > { %1322 = vmatprep.mubr.msk.f32.mxu1 %vm1453_vm0, %v1452_v0  ;;  %1318 = vmatmul.mubr.f32.vlgmr.msra.gmra.mxu0 %v271_v7 }
  0x30   : > { %1326 = vmatpush3.msra.mxu0 %v789_v30  ;;  %1327 = vmatprep.mubr.msk.f32.mxu0 %vm1453_vm0, %v1452_v0 }
  0x31   : > { %1335 = vmatprep.subr.mxu0 %v1452_v0  ;;  %1321 = vmatpush3.msra.mxu1 %v792_v33 }
  0x32   : > { %1323 = vmatmul.mubr.f32.vlgmr.msra.gmra.mxu1 %v1537_v3  ;;  %1330 = vmatprep.subr.mxu1 %v1452_v0 }
  0x33   : > { %1328 = vmatmul.mubr.f32.vlgmr.msra.gmra.mxu0 %v1541_v4  ;;  %1331 = vmatpush3.msra.mxu1 %v712_v29 }
  0x34   : > { %1336 = vmatpush3.msra.mxu0 %v790_v31  ;;  %1337 = vmatprep.mubr.msk.f32.mxu0 %vm1453_vm0, %v1452_v0 }
  0x35   : > { %1332 = vmatprep.mubr.msk.f32.mxu1 %vm1453_vm0, %v1452_v0  ;;  %1340 = vmatprep.subr.mxu1 %v1452_v0 }
  0x36   : > { %1333 = vmatmul.mubr.f32.vlgmr.msra.gmra.mxu1 %v1545_v5 }
  0x37   : > { %1338 = vmatmul.mubr.f32.vlgmr.msra.gmra.mxu0 %v1537_v3  ;;  %1341 = vmatpush3.msra.mxu1 %v712_v29 }
  0x38   : > { %1342 = vmatprep.mubr.msk.f32.mxu1 %vm1453_vm0, %v1452_v0 }
  0x3a   : > { %1343 = vmatmul.mubr.f32.vlgmr.msra.gmra.mxu1 %v1537_v3 }
  0xe3   : > { %v273_v8 = vpop.f32.mrf.mxu0 }
  0xe5   : > { %v1289_v9 = vpop.f32.mrf.mxu0 }
  0xe6   : > { %v349_v10 = vpop.f32.mrf.mxu1 }
  0xe7   : > { %v350_v11 = vadd.f32 %v349_v10, %v273_v8  ;;  %v423_v12 = vpop.f32.mrf.mxu0 }
  0xe8   : > { %v1294_v13 = vpop.f32.mrf.mxu1 }
  0xe9   : > { %v424_v14 = vadd.f32 %v423_v12, %v350_v11  ;;  %v1299_v15 = vpop.f32.mrf.mxu0 }
  0xea   : > { %v497_v16 = vpop.f32.mrf.mxu1 }
  0xeb   : > { %v498_v17 = vadd.f32 %v497_v16, %v424_v14  ;;  %v571_v18 = vpop.f32.mrf.mxu0 }
  0xec   : > { %v1304_v19 = vpop.f32.mrf.mxu1 }
  0xed   : > { %v572_v20 = vadd.f32 %v571_v18, %v498_v17  ;;  %v1309_v21 = vpop.f32.mrf.mxu0 }
  0xee   : > { %v643_v22 = vpop.f32.mrf.mxu1 }
  0xef   : > { %v644_v23 = vadd.f32 %v643_v22, %v572_v20  ;;  %v753_v39 = vpop.f32.mrf.mxu0 }
  0xf0   : > { %v1314_v24 = vpop.f32.mrf.mxu1 }
  0xf1   : > { %v647_v25 = vmax.f32 %v644_v23, 0.0  ;;  %v1319_v40 = vpop.f32.mrf.mxu0 }
  0xf2   : > { %v829_v43 = vpop.f32.mrf.mxu1 }
  0xf3   : > { %v649_v26 = vsel %vm648_vm2, %v647_v25, -inf  ;;  %v903_v41 = vpop.f32.mrf.mxu0  ;;  %v830_v44 = vadd.f32 %v829_v43, %v753_v39 }
  0xf4   : > { %650 = vmax.xlane.f32.xlu0 %v649_v26  ;;  %v1324_v45 = vpop.f32.mrf.mxu1 }
  0xf5   : > { %v1329_v42 = vpop.f32.mrf.mxu0  ;;  %v904_v46 = vadd.f32 %v903_v41, %v830_v44 }
  0xf6   : > { %v977_v47 = vpop.f32.mrf.mxu1 }
  0xf7   : > { %v978_v48 = vadd.f32 %v977_v47, %v904_v46  ;;  %v1051_v58 = vpop.f32.mrf.mxu0 }
  0xf8   : > { %v1334_v49 = vpop.f32.mrf.mxu1 }
  0xf9   : > { %v1052_v59 = vadd.f32 %v1051_v58, %v978_v48  ;;  %v1339_v60 = vpop.f32.mrf.mxu0 }
  0xfa   : > { %v1123_v61 = vpop.f32.mrf.mxu1 }
  0xfb   : > { %v1124_v62 = vadd.f32 %v1123_v61, %v1052_v59 }
  0xfc   : > { %v1344_v63 = vpop.f32.mrf.mxu1 }
  0xfd   : > { %1127 = vst.msk [vmem:[%s182_s17] sm:$0xff] %vm648_vm2, %v1124_v62 }
 0x17d   : > { %v651_v34 = vpop.xlane.xlu0 %650 }
 0x17e   : > { %v652_v35 = vsub.f32 %v647_v25, %v651_v34 }
 0x180   : > { %v653_v36 = vmul.f32 1.442695, %v652_v35 }
 0x182   : > { %1386 = vpow2.f32 %v653_v36 }
 0x18f   : > { %v1387_v37 = vpop.eup %1386 }
 0x190   : > { %v655_v38 = vsel %vm648_vm2, %v1387_v37, 0.0 }
 0x191   : > { %656 = vadd.xlane.f32.xlu0 %v655_v38 }
 0x21a   : > { %v657_v50 = vpop.xlane.xlu0 %656 }
 0x21b   : > { %1388 = vrcp.f32 %v657_v50 }
 0x228   : > { %v1389_v54 = vpop.eup %1388 }
 0x229   : > { %v659_v55 = vmul.f32 %v1389_v54, %v1387_v37 }
 0x22b   : > { %v667_v56 = vsel %vm664_vm4, %v659_v55, 0.0  ;;  %671 = vst.msk [vmem:[%s1602_s9] sm:$0xff] %vm648_vm2, %v659_v55 }
 0x22c   : > { %v668_v57 = vsel %vm648_vm2, %v667_v56, 0.0 }
 0x22d   : > { %669 = vadd.xlane.f32.xlu1 %v668_v57 }
 0x22e   : > { %1403 = shalt.err (!%p1400_p3)
}
 0x22f   : > { %s1404_s16 = scalar_lea.hbm %s1148_s26, 128  ;;  %s1408_s7 = scalar_lea.hbm %s1650_s3, 512 }
 0x230   : > { %p1405_p4 = scmp.ne.s32.totalorder %s1148_s26, %s1404_s16  ;;  %p1409_p9 = scmp.lt.s32.totalorder %s1148_s26, %s1650_s3 }
 0x231   : > { %p1410_p10 = scmp.lt.s32.totalorder %s1408_s7, %s1404_s16 }
 0x232   : > { %p1406_p7 = pnand %p1405_p4, %p1513_p5 }
 0x233   : > { %p1411_p11 = por %p1410_p10, %p1409_p9 }
 0x234   : > { %p1407_p8 = pneg %p1406_p7 }
 0x236   : > { %p1412_p12 = pnand %p1411_p11, %p1407_p8 }
 0x238   : > { %1415 = shalt.err (!%p1412_p12)
}
 0x239   : > { %1345 = dma.vmem_to_hbm [thread:$0]  (%p1513_p5), %s1151_s20, 128, %s1148_s26, %s1134_s27   ;;  %v1255_v3 = vsel %vm664_vm4, 1.0, %v1452_v0 }
 0x2b6   : > { %v670_v1 = vpop.xlane.xlu1 %669 }
 0x2b7   : > { %v672_v2 = vmul.f32 2.0, %v670_v1 }
 0x2b9   : > { %v673_v4 = vmul.f32 %v672_v2, %v659_v55 }
 0x2bb   : > { %v674_v5 = vsub.f32 %v673_v4, %v1255_v3 }
 0x2bd   : > { %675 = vst.msk [vmem:[%s1602_s9 + $0x8] sm:$0xff] %vm648_vm2, %v674_v5 }
 0x2be PF: > { %p1351_p13 = scmp.ge.s32.totalorder %s1450_s15, 2  ;;  %s1170_s11 = sand.u32 1, %s1438_s12  }
 0x2bf   : > { %s1171_s22 = scalar_lea.sflag [#allocation3], %s1170_s11 }
 0x2c0   : > { %p1348_p0 = pnand %p1351_p13, %p1517_p6 }
 0x2c2   : > { %p1349_p1 = pneg %p1348_p0 }
 0x2c4   : > { %1433 = dma.done.wait (%p1349_p1), %s1171_s22, 128  }
 0x2c5   : > { %1435 = vsyncadd (%p1349_p1), %s1171_s22, 4294967168  ;;  %p14_p5 = scmp.ge.s32.totalorder %s1500_s18, 6   ;;  %s1653_s12 = smov %s1442_s13 }
 0x2c6   : > { %s1654_s13 = smov %s1446_s14  ;;  %s1655_s14 = smov %s1511_s21 }
 0x2c7   : > { %s1656_s15 = smov %s1500_s18  ;;  %16 = sbr.rel (!%p14_p5) target bundleno = 3 (0x3), region = 78 }
 0x2cc   :  { %1176 = vsyncpa [#allocation3], 1 }
 0x2cd   :  { %1178 = vsyncpa [#allocation3 + $0x1], 1 }

</bundles_post_ra>
